<compile_context>
chip_gen: v6e
topology: v6e:2x2x1
jax: 0.10.0
libtpu: 0.0.40
codegen_flags: <defaults>
</compile_context>

<pallas_src>
import jax
import jax.numpy as jnp
from jax.experimental import pallas as pl
from jax.experimental.pallas import tpu as pltpu

IN_FEATURES = 28 * 28          # 784
HIDDEN = 150
OUT_FEATURES = 10

HIDDEN_PAD = 256               # 2 * 128
OUT_PAD = 128                  # 1 * 128
PARAM_ROWS = 8                 # packed per-feature params, sublane-aligned

BN_EPS = 1e-5


def _bn_relu(h, gamma, beta, inv_n):
    """Training-mode BatchNorm1d (batch mean, biased variance) + ReLU.
    One-pass statistics (sum & sum-of-squares), folded into a single FMA pass.
    All math in f32.  Padded feature columns stay exactly 0 because their gamma
    (and hence scale) is 0 and their beta is 0."""
    mean = jnp.sum(h, axis=0, keepdims=True) * inv_n             # E[h]
    msq = jnp.sum(h * h, axis=0, keepdims=True) * inv_n          # E[h^2]
    var = jnp.maximum(msq - mean * mean, 0.0)
    scale = jax.lax.rsqrt(var + BN_EPS) * gamma                  # (1, HIDDEN_PAD)
    shift = beta - mean * scale                                  # (1, HIDDEN_PAD)
    return jnp.maximum(h * scale + shift, 0.0)


def mlp_kernel(x_ref, w1_ref, w2_ref, w3_ref, p_ref, o_ref):
    inv_n = 1.0 / x_ref.shape[0]        # static batch size (training-mode BN denom)

    # Unpack the packed per-feature params (one DMA instead of five).
    g1 = p_ref[0:1, :]                  # (1, 256) f32  gamma1
    be1 = p_ref[1:2, :]                 #               beta1
    g2 = p_ref[2:3, :]                  #               gamma2
    be2 = p_ref[3:4, :]                 #               beta2
    b3 = p_ref[4:5, :OUT_PAD]           # (1, 128) f32  layer3 bias

    # layer1: Linear(784 -> 256, no bias: cancels under BN) + BN + ReLU.
    # bf16 cast done in-kernel; K=784 contraction is padded/masked by Mosaic.
    x = x_ref[...].astype(jnp.bfloat16)                               # (B, 784)
    h1 = jnp.dot(x, w1_ref[...], preferred_element_type=jnp.float32)  # (B, 256) f32
    h1 = _bn_relu(h1, g1, be1, inv_n)

    # layer2: Linear(256 -> 256, no bias) + BN + ReLU
    h2 = jnp.dot(h1.astype(jnp.bfloat16), w2_ref[...],
                 preferred_element_type=jnp.float32)
    h2 = _bn_relu(h2, g2, be2, inv_n)                                 # (B, 256) f32

    # layer3: Linear(256 -> 128) + bias (padded logit lanes stay exactly 0)
    o_ref[...] = jnp.dot(h2.astype(jnp.bfloat16), w3_ref[...],
                         preferred_element_type=jnp.float32) + b3


def mnist_dense_float(x_nchw, params):
    """x_nchw: (B, 1, 28, 28) float.  Returns (B, 10) f32 logits."""
    B = x_nchw.shape[0]
    # == x.view(-1, 784); no padding / no extra HBM materialization of x.
    x2d = x_nchw.reshape(B, IN_FEATURES).astype(jnp.float32)

    vmem = pl.BlockSpec(memory_space=pltpu.MemorySpace.VMEM)
    args = (x2d, params["w1"], params["w2"], params["w3"], params["p"])

    out_pad = pl.pallas_call(
        mlp_kernel,
        out_shape=jax.ShapeDtypeStruct((B, OUT_PAD), jnp.float32),
        in_specs=[vmem] * len(args),
        out_specs=vmem,
        compiler_params=pltpu.CompilerParams(
            vmem_limit_bytes=48 * 1024 * 1024),   # > v5e's 16 MiB default, safe on v7x
    )(*args)

    # Slice the lane-padded logits back to 10.  (A consumer that can take the padded
    # (B, 128) directly — e.g. argmax over the first 10 lanes — should skip this.)
    return out_pad[:, :OUT_FEATURES]


def init_params(key):
    """Deterministic synthetic weights with PyTorch nn.Linear init statistics,
    stored transposed (in, out), zero-padded to lane-dense shapes, bf16 weights.
    layer1/layer2 Linear biases are omitted (they cancel under training-mode BN).
    The five per-feature f32 vectors are packed into one (8, 256) array:
      row 0: gamma1   row 1: beta1   row 2: gamma2   row 3: beta2   row 4: bias3.
    Invariant (load-bearing): all padded weight columns / gamma lanes are EXACTLY 0,
    which keeps padded features 0 through BN+ReLU and padded logits 0."""
    k1, k2, k3, k4 = jax.random.split(key, 4)

    def lin_w(k, fan_in, fan_out, pad_in, pad_out):
        bound = 1.0 / (fan_in ** 0.5)
        w = jax.random.uniform(k, (fan_in, fan_out), jnp.float32, -bound, bound)
        w = jnp.pad(w, ((0, pad_in - fan_in), (0, pad_out - fan_out)))
        return w.astype(jnp.bfloat16)

    w1 = lin_w(k1, IN_FEATURES, HIDDEN, IN_FEATURES, HIDDEN_PAD)   # (784, 256)
    w2 = lin_w(k2, HIDDEN, HIDDEN, HIDDEN_PAD, HIDDEN_PAD)         # (256, 256)
    w3 = lin_w(k3, HIDDEN, OUT_FEATURES, HIDDEN_PAD, OUT_PAD)      # (256, 128)

    bound3 = 1.0 / (HIDDEN ** 0.5)
    b3 = jax.random.uniform(k4, (OUT_FEATURES,), jnp.float32, -bound3, bound3)

    p = jnp.zeros((PARAM_ROWS, HIDDEN_PAD), jnp.float32)
    p = p.at[0, :HIDDEN].set(1.0)          # gamma1 (PyTorch default); padded lanes 0
    p = p.at[2, :HIDDEN].set(1.0)          # gamma2
    p = p.at[4, :OUT_FEATURES].set(b3)     # layer3 bias; padded logit lanes 0
    # rows 1 / 3 are beta1 / beta2 = 0 (PyTorch default); rows 5-7 unused padding.

    return dict(w1=w1, w2=w2, w3=w3, p=p)


if __name__ == "__main__":
    key = jax.random.PRNGKey(0)
    kx, kp = jax.random.split(key)

    B = 8
    x = jax.random.normal(kx, (B, 1, 28, 28), dtype=jnp.float32)   # NCHW MNIST-like
    params = init_params(kp)

    out = mnist_dense_float(x, params)
    jax.block_until_ready(out)
    assert out.shape == (B, OUT_FEATURES) and out.dtype == jnp.float32
    assert bool(jnp.all(jnp.isfinite(out)))
    print("KERNEL_OK")
</pallas_src>

<mosaic_0001>
module attributes {stable_mosaic.version = 11 : i64} {
  func.func @mlp_kernel(%arg0: memref<8x784xf32, #tpu.memory_space<vmem>>, %arg1: memref<784x256xbf16, #tpu.memory_space<vmem>>, %arg2: memref<256x256xbf16, #tpu.memory_space<vmem>>, %arg3: memref<256x128xbf16, #tpu.memory_space<vmem>>, %arg4: memref<8x256xf32, #tpu.memory_space<vmem>>, %arg5: memref<8x128xf32, #tpu.memory_space<vmem>>) attributes {dimension_semantics = [], scalar_prefetch = 0 : i64, scratch_operands = 0 : i64, tpu.core_type = #tpu.core_type<tc>} {
    %c0 = arith.constant 0 : index
    %c0_0 = arith.constant 0 : index
    %0 = vector.load %arg4[%c0, %c0_0] : memref<8x256xf32, #tpu.memory_space<vmem>>, vector<1x256xf32>
    %c1 = arith.constant 1 : index
    %c0_1 = arith.constant 0 : index
    %1 = vector.load %arg4[%c1, %c0_1] : memref<8x256xf32, #tpu.memory_space<vmem>>, vector<1x256xf32>
    %c2 = arith.constant 2 : index
    %c0_2 = arith.constant 0 : index
    %2 = vector.load %arg4[%c2, %c0_2] : memref<8x256xf32, #tpu.memory_space<vmem>>, vector<1x256xf32>
    %c3 = arith.constant 3 : index
    %c0_3 = arith.constant 0 : index
    %3 = vector.load %arg4[%c3, %c0_3] : memref<8x256xf32, #tpu.memory_space<vmem>>, vector<1x256xf32>
    %c4 = arith.constant 4 : index
    %c0_4 = arith.constant 0 : index
    %4 = vector.load %arg4[%c4, %c0_4] : memref<8x256xf32, #tpu.memory_space<vmem>>, vector<1x128xf32>
    %c0_5 = arith.constant 0 : index
    %c0_6 = arith.constant 0 : index
    %5 = vector.load %arg0[%c0_5, %c0_6] : memref<8x784xf32, #tpu.memory_space<vmem>>, vector<8x784xf32>
    %6 = arith.truncf %5 : vector<8x784xf32> to vector<8x784xbf16>
    %c0_7 = arith.constant 0 : index
    %c0_8 = arith.constant 0 : index
    %7 = vector.load %arg1[%c0_7, %c0_8] : memref<784x256xbf16, #tpu.memory_space<vmem>>, vector<784x256xbf16>
    %cst = arith.constant dense<0.000000e+00> : vector<8x256xf32>
    %8 = tpu.matmul %6, %7, %cst {dimension_numbers = #tpu.dot_dimension_numbers<[1], [0], [0], [1], [0, 0, 1, 1], [], []>} : vector<8x784xbf16>, vector<784x256xbf16>, vector<8x256xf32> -> vector<8x256xf32>
    %cst_9 = arith.constant dense<0.000000e+00> : vector<256xf32>
    %9 = vector.multi_reduction <add>, %8, %cst_9 [0] : vector<8x256xf32> to vector<256xf32>
    %10 = vector.shape_cast %9 : vector<256xf32> to vector<1x256xf32>
    %cst_10 = arith.constant 1.250000e-01 : f32
    %11 = vector.broadcast %cst_10 : f32 to vector<1x256xf32>
    %12 = arith.mulf %10, %11 : vector<1x256xf32>
    %13 = arith.mulf %8, %8 : vector<8x256xf32>
    %cst_11 = arith.constant dense<0.000000e+00> : vector<256xf32>
    %14 = vector.multi_reduction <add>, %13, %cst_11 [0] : vector<8x256xf32> to vector<256xf32>
    %15 = vector.shape_cast %14 : vector<256xf32> to vector<1x256xf32>
    %cst_12 = arith.constant 1.250000e-01 : f32
    %16 = vector.broadcast %cst_12 : f32 to vector<1x256xf32>
    %17 = arith.mulf %15, %16 : vector<1x256xf32>
    %18 = arith.mulf %12, %12 : vector<1x256xf32>
    %19 = arith.subf %17, %18 : vector<1x256xf32>
    %cst_13 = arith.constant 0.000000e+00 : f32
    %20 = vector.broadcast %cst_13 : f32 to vector<1x256xf32>
    %21 = arith.maximumf %19, %20 : vector<1x256xf32>
    %cst_14 = arith.constant 9.99999974E-6 : f32
    %22 = vector.broadcast %cst_14 : f32 to vector<1x256xf32>
    %23 = arith.addf %21, %22 : vector<1x256xf32>
    %24 = math.rsqrt %23 : vector<1x256xf32>
    %25 = arith.mulf %24, %0 : vector<1x256xf32>
    %26 = arith.mulf %12, %25 : vector<1x256xf32>
    %27 = arith.subf %1, %26 : vector<1x256xf32>
    %28 = vector.broadcast %25 : vector<1x256xf32> to vector<8x256xf32>
    %29 = arith.mulf %8, %28 : vector<8x256xf32>
    %30 = vector.broadcast %27 : vector<1x256xf32> to vector<8x256xf32>
    %31 = arith.addf %29, %30 : vector<8x256xf32>
    %cst_15 = arith.constant 0.000000e+00 : f32
    %32 = vector.broadcast %cst_15 : f32 to vector<8x256xf32>
    %33 = arith.maximumf %31, %32 : vector<8x256xf32>
    %34 = arith.truncf %33 : vector<8x256xf32> to vector<8x256xbf16>
    %c0_16 = arith.constant 0 : index
    %c0_17 = arith.constant 0 : index
    %35 = vector.load %arg2[%c0_16, %c0_17] : memref<256x256xbf16, #tpu.memory_space<vmem>>, vector<256x256xbf16>
    %cst_18 = arith.constant dense<0.000000e+00> : vector<8x256xf32>
    %36 = tpu.matmul %34, %35, %cst_18 {dimension_numbers = #tpu.dot_dimension_numbers<[1], [0], [0], [1], [0, 0, 1, 1], [], []>} : vector<8x256xbf16>, vector<256x256xbf16>, vector<8x256xf32> -> vector<8x256xf32>
    %cst_19 = arith.constant dense<0.000000e+00> : vector<256xf32>
    %37 = vector.multi_reduction <add>, %36, %cst_19 [0] : vector<8x256xf32> to vector<256xf32>
    %38 = vector.shape_cast %37 : vector<256xf32> to vector<1x256xf32>
    %cst_20 = arith.constant 1.250000e-01 : f32
    %39 = vector.broadcast %cst_20 : f32 to vector<1x256xf32>
    %40 = arith.mulf %38, %39 : vector<1x256xf32>
    %41 = arith.mulf %36, %36 : vector<8x256xf32>
    %cst_21 = arith.constant dense<0.000000e+00> : vector<256xf32>
    %42 = vector.multi_reduction <add>, %41, %cst_21 [0] : vector<8x256xf32> to vector<256xf32>
    %43 = vector.shape_cast %42 : vector<256xf32> to vector<1x256xf32>
    %cst_22 = arith.constant 1.250000e-01 : f32
    %44 = vector.broadcast %cst_22 : f32 to vector<1x256xf32>
    %45 = arith.mulf %43, %44 : vector<1x256xf32>
    %46 = arith.mulf %40, %40 : vector<1x256xf32>
    %47 = arith.subf %45, %46 : vector<1x256xf32>
    %cst_23 = arith.constant 0.000000e+00 : f32
    %48 = vector.broadcast %cst_23 : f32 to vector<1x256xf32>
    %49 = arith.maximumf %47, %48 : vector<1x256xf32>
    %cst_24 = arith.constant 9.99999974E-6 : f32
    %50 = vector.broadcast %cst_24 : f32 to vector<1x256xf32>
    %51 = arith.addf %49, %50 : vector<1x256xf32>
    %52 = math.rsqrt %51 : vector<1x256xf32>
    %53 = arith.mulf %52, %2 : vector<1x256xf32>
    %54 = arith.mulf %40, %53 : vector<1x256xf32>
    %55 = arith.subf %3, %54 : vector<1x256xf32>
    %56 = vector.broadcast %53 : vector<1x256xf32> to vector<8x256xf32>
    %57 = arith.mulf %36, %56 : vector<8x256xf32>
    %58 = vector.broadcast %55 : vector<1x256xf32> to vector<8x256xf32>
    %59 = arith.addf %57, %58 : vector<8x256xf32>
    %cst_25 = arith.constant 0.000000e+00 : f32
    %60 = vector.broadcast %cst_25 : f32 to vector<8x256xf32>
    %61 = arith.maximumf %59, %60 : vector<8x256xf32>
    %62 = arith.truncf %61 : vector<8x256xf32> to vector<8x256xbf16>
    %c0_26 = arith.constant 0 : index
    %c0_27 = arith.constant 0 : index
    %63 = vector.load %arg3[%c0_26, %c0_27] : memref<256x128xbf16, #tpu.memory_space<vmem>>, vector<256x128xbf16>
    %cst_28 = arith.constant dense<0.000000e+00> : vector<8x128xf32>
    %64 = tpu.matmul %62, %63, %cst_28 {dimension_numbers = #tpu.dot_dimension_numbers<[1], [0], [0], [1], [0, 0, 1, 1], [], []>} : vector<8x256xbf16>, vector<256x128xbf16>, vector<8x128xf32> -> vector<8x128xf32>
    %65 = vector.broadcast %4 : vector<1x128xf32> to vector<8x128xf32>
    %66 = arith.addf %64, %65 : vector<8x128xf32>
    %c0_29 = arith.constant 0 : index
    %c0_30 = arith.constant 0 : index
    %67 = vector.load %arg5[%c0_29, %c0_30] : memref<8x128xf32, #tpu.memory_space<vmem>>, vector<8x128xf32>
    tpu.vector_store %arg5[%c0_29, %c0_30], %66 {strides = array<i32>} : memref<8x128xf32, #tpu.memory_space<vmem>>, vector<8x128xf32>,
    return
  }
}

</mosaic_0001>

<bundles_post_ra>
// kernel: tpu_custom_call.1
= control target key start
LH: loop header
LB: loop body
LE: loop exit
PB: predicated region body
PF: predicated region fallthrough
CT: control target
= control target key end

     0   :  { %10 = vsyncpa [#allocation3], 0  ;;  %s2115_s0 = inlined_call_operand.hbm [shape: f32[8,784], index: 0, kind: input, shape index: {}]   ;;  %s2116_s1 = inlined_call_operand.hbm [shape: bf16[784,256], index: 1, kind: input, shape index: {}]   ;;  %s2117_s2 = inlined_call_operand.hbm [shape: bf16[256,256], index: 2, kind: input, shape index: {}]   ;;  %s2118_s3 = inlined_call_operand.hbm [shape: bf16[256,128], index: 3, kind: input, shape index: {}]   ;;  %s2119_s4 = inlined_call_operand.hbm [shape: f32[8,256], index: 4, kind: input, shape index: {}]   ;;  %s2120_s5 = inlined_call_operand.hbm [shape: f32[8,128], index: 5, kind: output, shape index: {}]  }
   0x1   :  { %11 = vsyncpa [#allocation6], 0 }
   0x2   :  { %12 = vsyncpa [#allocation9], 0 }
   0x3   :  { %13 = vsyncpa [#allocation4], 0  ;;  %s2013_s18 = smov [#allocation5]  }
   0x4   :  { %s29_s19 = sshll.u32 %s2013_s18, 4  ;;  %s30_s19 = int_to_ptr.vmem [resolvable:$true] %s29_s19 }
   0x5   :  { %s1893_s20 = scalar_lea.vmem %s30_s19, 12544  ;;  %p1898_p1 = scmp.lt.s32.totalorder %s30_s19, %s30_s19 }
   0x6   :  { %p1894_p0 = scmp.ne.s32.totalorder %s30_s19, %s1893_s20  ;;  %p1899_p2 = scmp.lt.s32.totalorder %s1893_s20, %s1893_s20 }
   0x8   :  { %p1900_p3 = por %p1899_p2, %p1898_p1 }
   0xa   :  { %p1901_p4 = pnand %p1900_p3, %p1894_p0 }
   0xc   :  { %1904 = shalt.err (!%p1901_p4)
}
   0xd   :  { %s2014_s21 = smov 128   ;;  %s2015_s22 = smov 8  }
   0xe   :  { %35 = dma.hbm_to_vmem [thread:$0]  %s2116_s1, 12544, %s30_s19, [#allocation6], %s2014_s21, %s2014_s21, %s2015_s22  }
   0xf   :  { %s2016_s25 = smov [#allocation8]  }
  0x10   :  { %s53_s26 = sshll.u32 %s2016_s25, 4  ;;  %s54_s26 = int_to_ptr.vmem [resolvable:$true] %s53_s26 }
  0x11   :  { %s1913_s27 = scalar_lea.vmem %s54_s26, 2048  ;;  %p1918_p6 = scmp.lt.s32.totalorder %s54_s26, %s54_s26 }
  0x12   :  { %p1914_p5 = scmp.ne.s32.totalorder %s54_s26, %s1913_s27  ;;  %p1919_p7 = scmp.lt.s32.totalorder %s1913_s27, %s1913_s27 }
  0x14   :  { %p1920_p8 = por %p1919_p7, %p1918_p6 }
  0x16   :  { %p1921_p9 = pnand %p1920_p8, %p1914_p5 }
  0x18   :  { %1924 = shalt.err (!%p1921_p9)
}
  0x19   :  { %s2017_s28 = smov 64   ;;  %s2018_s29 = smov 4  }
  0x1a   :  { %59 = dma.hbm_to_vmem [thread:$0]  %s2118_s3, 2048, %s54_s26, [#allocation9], %s2017_s28, %s2017_s28, %s2018_s29  }
  0x1b   :  { %s2019_s7 = smov [#allocation2]   ;;  %s2020_s9 = smov [#allocation7]  }
  0x1c   :  { %s20_s8 = sshll.u32 %s2019_s7, 4  ;;  %s41_s1 = sshll.u32 %s2020_s9, 4  ;;  %s21_s8 = int_to_ptr.vmem [resolvable:$true] %s20_s8  ;;  %s42_s1 = int_to_ptr.vmem [resolvable:$true] %s41_s1 }
  0x1d   :  { %s1933_s10 = scalar_lea.vmem %s21_s8, 896  ;;  %p1938_p11 = scmp.lt.s32.totalorder %s21_s8, %s21_s8 }
  0x1e   :  { %p1934_p10 = scmp.ne.s32.totalorder %s21_s8, %s1933_s10  ;;  %p1939_p12 = scmp.lt.s32.totalorder %s1933_s10, %s1933_s10 }
  0x20   :  { %p1940_p13 = por %p1939_p12, %p1938_p11 }
  0x22   :  { %p1941_p0 = pnand %p1940_p13, %p1934_p10 }
  0x24   :  { %1944 = shalt.err (!%p1941_p0)
}
  0x25   :  { %23 = dma.hbm_to_vmem [thread:$0]  %s2115_s0, 896, %s21_s8, [#allocation3]  }
  0x26   :  { %s1953_s13 = scalar_lea.vmem %s42_s1, 4096  ;;  %p1958_p2 = scmp.lt.s32.totalorder %s42_s1, %s42_s1 }
  0x27   :  { %p1954_p1 = scmp.ne.s32.totalorder %s42_s1, %s1953_s13  ;;  %p1959_p3 = scmp.lt.s32.totalorder %s1953_s13, %s1953_s13 }
  0x29   :  { %p1960_p4 = por %p1959_p3, %p1958_p2 }
  0x2b   :  { %p1961_p5 = pnand %p1960_p4, %p1954_p1 }
  0x2d   :  { %1964 = shalt.err (!%p1961_p5)
}
  0x2e   :  { %47 = dma.hbm_to_vmem [thread:$0]  %s2117_s2, 4096, %s42_s1, [#allocation6], %s2014_s21, %s2014_s21, %s2015_s22  }
  0x2f   :  { %s2021_s15 = smov [#allocation10]  }
  0x30   :  { %s66_s16 = sshll.u32 %s2021_s15, 4  ;;  %s67_s16 = int_to_ptr.vmem [resolvable:$true] %s66_s16 }
  0x31   :  { %s1973_s17 = scalar_lea.vmem %s67_s16, 256  ;;  %p1978_p7 = scmp.lt.s32.totalorder %s67_s16, %s67_s16 }
  0x32   :  { %p1974_p6 = scmp.ne.s32.totalorder %s67_s16, %s1973_s17  ;;  %p1979_p8 = scmp.lt.s32.totalorder %s1973_s17, %s1973_s17 }
  0x34   :  { %p1980_p9 = por %p1979_p8, %p1978_p7 }
  0x36   :  { %p1981_p10 = pnand %p1980_p9, %p1974_p6 }
  0x38   :  { %1984 = shalt.err (!%p1981_p10)
}
  0x39   :  { %69 = dma.hbm_to_vmem [thread:$0]  %s2119_s4, 256, %s67_s16, [#allocation9]  }
  0x3a   :  { %2005 = dma.done.wait [#allocation3], 896  }
  0x3b   :  { %2006 = vsyncadd [#allocation3], 4294966400 }
  0x3c   :  { %2007 = dma.done.wait [#allocation6], 16640  }
  0x3d   :  { %2008 = vsyncadd [#allocation6], 4294950656 }
  0x3e   :  { %2009 = dma.done.wait [#allocation9], 2304  }
  0x3f   :  { %2010 = vsyncadd [#allocation9], 4294964992  ;;  %v1666_v0 = vld [vmem:[#allocation5 + $0x74] ss:$8 sps:$4 sm:$0xff]   ;;  %v1670_v2 = vld [vmem:[#allocation5 + $0x70] ss:$8 sps:$4 sm:$0xff]  }
  0x40   :  { %v1668_v1 = vld [vmem:[#allocation5 + $0x174] ss:$8 sps:$4 sm:$0xff]   ;;  %700 = vmatprep.subr.bf16.mxu0 %v1666_v0  ;;  %v1671_v3 = vld [vmem:[#allocation5 + $0x170] ss:$8 sps:$4 sm:$0xff]   ;;  %v1672_v4 = vld [vmem:[#allocation5 + $0x64] ss:$8 sps:$4 sm:$0xff]  }
  0x41   :  { %741 = vmatprep.subr.bf16.mxu1 %v1668_v1  ;;  %701 = vmatpush1.bf16.msra.mxu0 %v1670_v2  ;;  %v1674_v5 = vld [vmem:[#allocation5 + $0x164] ss:$8 sps:$4 sm:$0xff]   ;;  %v1676_v6 = vld [vmem:[#allocation5 + $0x60] ss:$8 sps:$4 sm:$0xff]   ;;  %v1678_v8 = vld [vmem:[#allocation5 + $0x54] ss:$8 sps:$4 sm:$0xff]  }
  0x42   :  { %742 = vmatpush1.bf16.msra.mxu1 %v1671_v3  ;;  %702 = vmatprep.subr.bf16.mxu0 %v1672_v4  ;;  %v1677_v7 = vld [vmem:[#allocation5 + $0x160] ss:$8 sps:$4 sm:$0xff]   ;;  %v1680_v9 = vld [vmem:[#allocation5 + $0x154] ss:$8 sps:$4 sm:$0xff]   ;;  %v1682_v10 = vld [vmem:[#allocation5 + $0x50] ss:$8 sps:$4 sm:$0xff]  }
  0x43   :  { %743 = vmatprep.subr.bf16.mxu1 %v1674_v5  ;;  %v1683_v11 = vld [vmem:[#allocation5 + $0x150] ss:$8 sps:$4 sm:$0xff]   ;;  %v1684_v12 = vld [vmem:[#allocation5 + $0x44] ss:$8 sps:$4 sm:$0xff]   ;;  %v1688_v14 = vld [vmem:[#allocation5 + $0x40] ss:$8 sps:$4 sm:$0xff]  }
  0x44   :  { %v1686_v13 = vld [vmem:[#allocation5 + $0x144] ss:$8 sps:$4 sm:$0xff]   ;;  %v1689_v15 = vld [vmem:[#allocation5 + $0x140] ss:$8 sps:$4 sm:$0xff]   ;;  %v1690_v16 = vld [vmem:[#allocation5 + $0x34] ss:$8 sps:$4 sm:$0xff]  }
  0x45   :  { %703 = vmatpush1.bf16.msra.mxu0 %v1676_v6  ;;  %v1692_v17 = vld [vmem:[#allocation5 + $0x134] ss:$8 sps:$4 sm:$0xff]   ;;  %v1694_v18 = vld [vmem:[#allocation5 + $0x30] ss:$8 sps:$4 sm:$0xff]   ;;  %v1696_v20 = vld [vmem:[#allocation5 + $0x24] ss:$8 sps:$4 sm:$0xff]  }
  0x46   :  { %744 = vmatpush1.bf16.msra.mxu1 %v1677_v7  ;;  %704 = vmatprep.subr.bf16.mxu0 %v1678_v8  ;;  %v1695_v19 = vld [vmem:[#allocation5 + $0x130] ss:$8 sps:$4 sm:$0xff]   ;;  %v1698_v21 = vld [vmem:[#allocation5 + $0x124] ss:$8 sps:$4 sm:$0xff]   ;;  %v1700_v22 = vld [vmem:[#allocation5 + $0x20] ss:$8 sps:$4 sm:$0xff]  }
  0x47   :  { %745 = vmatprep.subr.bf16.mxu1 %v1680_v9  ;;  %v1701_v23 = vld [vmem:[#allocation5 + $0x120] ss:$8 sps:$4 sm:$0xff]   ;;  %v1702_v24 = vld [vmem:[#allocation5 + $0x14] ss:$8 sps:$4 sm:$0xff]   ;;  %v1706_v26 = vld [vmem:[#allocation5 + $0x10] ss:$8 sps:$4 sm:$0xff]  }
  0x48   :  { %v1704_v25 = vld [vmem:[#allocation5 + $0x114] ss:$8 sps:$4 sm:$0xff]   ;;  %v1707_v27 = vld [vmem:[#allocation5 + $0x110] ss:$8 sps:$4 sm:$0xff]   ;;  %v1708_v28 = vld [vmem:[#allocation5 + $0x4] ss:$8 sps:$4 sm:$0xff]  }
  0x49   :  { %705 = vmatpush1.bf16.msra.mxu0 %v1682_v10  ;;  %v1710_v29 = vld [vmem:[#allocation5 + $0x104] ss:$8 sps:$4 sm:$0xff]   ;;  %v1712_v30 = vld [vmem:[#allocation5] ss:$8 sps:$4 sm:$0xff]   ;;  %v1714_v32 = vld [vmem:[#allocation5 + $0xf4] ss:$8 sps:$4 sm:$0xff]  }
  0x4a   :  { %746 = vmatpush1.bf16.msra.mxu1 %v1683_v11  ;;  %706 = vmatprep.subr.bf16.mxu0 %v1684_v12  ;;  %v1713_v31 = vld [vmem:[#allocation5 + $0x100] ss:$8 sps:$4 sm:$0xff]   ;;  %v1716_v33 = vld [vmem:[#allocation5 + $0x1f4] ss:$8 sps:$4 sm:$0xff]   ;;  %v1718_v34 = vld [vmem:[#allocation5 + $0xf0] ss:$8 sps:$4 sm:$0xff]  }
  0x4b   :  { %747 = vmatprep.subr.bf16.mxu1 %v1686_v13  ;;  %v1719_v35 = vld [vmem:[#allocation5 + $0x1f0] ss:$8 sps:$4 sm:$0xff]   ;;  %v1720_v36 = vld [vmem:[#allocation5 + $0xe4] ss:$8 sps:$4 sm:$0xff]   ;;  %v1724_v38 = vld [vmem:[#allocation5 + $0xe0] ss:$8 sps:$4 sm:$0xff]  }
  0x4c   :  { %v1722_v37 = vld [vmem:[#allocation5 + $0x1e4] ss:$8 sps:$4 sm:$0xff]   ;;  %v1725_v39 = vld [vmem:[#allocation5 + $0x1e0] ss:$8 sps:$4 sm:$0xff]   ;;  %v1726_v40 = vld [vmem:[#allocation5 + $0xd4] ss:$8 sps:$4 sm:$0xff]  }
  0x4d   :  { %707 = vmatpush1.bf16.msra.mxu0 %v1688_v14  ;;  %v1728_v41 = vld [vmem:[#allocation5 + $0x1d4] ss:$8 sps:$4 sm:$0xff]   ;;  %v1730_v42 = vld [vmem:[#allocation5 + $0xd0] ss:$8 sps:$4 sm:$0xff]   ;;  %v1732_v44 = vld [vmem:[#allocation5 + $0xc4] ss:$8 sps:$4 sm:$0xff]  }
  0x4e   :  { %748 = vmatpush1.bf16.msra.mxu1 %v1689_v15  ;;  %708 = vmatprep.subr.bf16.mxu0 %v1690_v16  ;;  %v1731_v43 = vld [vmem:[#allocation5 + $0x1d0] ss:$8 sps:$4 sm:$0xff]   ;;  %v1734_v45 = vld [vmem:[#allocation5 + $0x1c4] ss:$8 sps:$4 sm:$0xff]   ;;  %v1736_v47 = vld [vmem:[#allocation5 + $0xc0] ss:$8 sps:$4 sm:$0xff]  }
  0x4f   :  { %749 = vmatprep.subr.bf16.mxu1 %v1692_v17  ;;  %v95_v46 = vld [vmem:[#allocation2 + $0x8] sm:$0xff]  ;;  %v1737_v48 = vld [vmem:[#allocation5 + $0x1c0] ss:$8 sps:$4 sm:$0xff]   ;;  %v1744_v56 = vld [vmem:[#allocation5 + $0xa4] ss:$8 sps:$4 sm:$0xff]   ;;  %vm696_vm0 = vcmask 130048  }
  0x50   :  { %v102_v49 = vpack.c.bf16 %v95_v46, %v95_v46  ;;  %v97_v50 = vld [vmem:[#allocation2 + $0x18] sm:$0xff]  ;;  %v1738_v51 = vld [vmem:[#allocation5 + $0xb4] ss:$8 sps:$4 sm:$0xff]   ;;  %v1742_v54 = vld [vmem:[#allocation5 + $0xb0] ss:$8 sps:$4 sm:$0xff]   ;;  %s2024_s2 = smov [#allocation11]  }
  0x51   :  { %709 = vmatpush1.bf16.msra.mxu0 %v1694_v18  ;;  %v104_v52 = vpack.c.bf16 %v97_v50, %v97_v50  ;;  %v1740_v53 = vld [vmem:[#allocation5 + $0x1b4] ss:$8 sps:$4 sm:$0xff]   ;;  %v1743_v55 = vld [vmem:[#allocation5 + $0x1b0] ss:$8 sps:$4 sm:$0xff]   ;;  %v1746_v57 = vld [vmem:[#allocation5 + $0x1a4] ss:$8 sps:$4 sm:$0xff]  }
  0x52   :  { %750 = vmatpush1.bf16.msra.mxu1 %v1695_v19  ;;  %710 = vmatprep.subr.bf16.mxu0 %v1696_v20  ;;  %v1748_v58 = vld [vmem:[#allocation5 + $0xa0] ss:$8 sps:$4 sm:$0xff]   ;;  %v1750_v60 = vld [vmem:[#allocation5 + $0x94] ss:$8 sps:$4 sm:$0xff]   ;;  %v1754_v62 = vld [vmem:[#allocation5 + $0x90] ss:$8 sps:$4 sm:$0xff]  }
  0x53   :  { %751 = vmatprep.subr.bf16.mxu1 %v1698_v21  ;;  %732 = vmatprep.mubr.bf16.mxu0 %v102_v49  ;;  %v1749_v59 = vld [vmem:[#allocation5 + $0x1a0] ss:$8 sps:$4 sm:$0xff]   ;;  %v1752_v61 = vld [vmem:[#allocation5 + $0x194] ss:$8 sps:$4 sm:$0xff]   ;;  %v1755_v63 = vld [vmem:[#allocation5 + $0x190] ss:$8 sps:$4 sm:$0xff]  }
  0x54   :  { %773 = vmatprep.mubr.bf16.mxu1 %v104_v52  ;;  %v1756_v0 = vld [vmem:[#allocation5 + $0x84] ss:$8 sps:$4 sm:$0xff]   ;;  %v1760_v2 = vld [vmem:[#allocation5 + $0x80] ss:$8 sps:$4 sm:$0xff]   ;;  %v96_v5 = vld [vmem:[#allocation2 + $0x10] sm:$0xff]  ;;  %v2022_v19 = vmov 0  }
  0x55   :  { %711 = vmatpush1.bf16.msra.mxu0 %v1700_v22  ;;  %v1758_v1 = vld [vmem:[#allocation5 + $0x184] ss:$8 sps:$4 sm:$0xff]   ;;  %v1761_v3 = vld [vmem:[#allocation5 + $0x180] ss:$8 sps:$4 sm:$0xff]   ;;  %v1764_v6 = vld [vmem:[#allocation5 + $0x274] ss:$8 sps:$4 sm:$0xff]   ;;  %v103_v8 = vpack.c.bf16 %v96_v5, %v96_v5 }
  0x56   :  { %752 = vmatpush1.bf16.msra.mxu1 %v1701_v23  ;;  %712 = vmatprep.subr.bf16.mxu0 %v1702_v24  ;;  %v94_v4 = vld [vmem:[#allocation2] sm:$0xff]  ;;  %v1762_v9 = vld [vmem:[#allocation5 + $0x270] ss:$8 sps:$4 sm:$0xff]   ;;  %v1770_v14 = vld [vmem:[#allocation5 + $0x254] ss:$8 sps:$4 sm:$0xff]   ;;  %s1474_s4 = sshll.u32 %s2024_s2, 4  ;;  %s1475_s4 = int_to_ptr.vmem [resolvable:$true] %s1474_s4 }
  0x57   :  { %753 = vmatprep.subr.bf16.mxu1 %v1704_v25  ;;  %v101_v7 = vpack.c.bf16 %v94_v4, %v94_v4  ;;  %v1767_v10 = vld [vmem:[#allocation5 + $0x264] ss:$8 sps:$4 sm:$0xff]   ;;  %v1807_v11 = vld [vmem:[#allocation5 + $0x300] ss:$8 sps:$4 sm:$0xff]   ;;  %v100_v15 = vld [vmem:[#allocation2 + $0x30] sm:$0xff]  ;;  %s1985_s19 = scalar_lea.vmem %s1475_s4, 128  ;;  %p1990_p12 = scmp.lt.s32.totalorder %s1475_s4, %s1475_s4 }
  0x58   :  { %v1809_v12 = vld [vmem:[#allocation5 + $0x304] ss:$8 sps:$4 sm:$0xff]   ;;  %v1765_v13 = vld [vmem:[#allocation5 + $0x260] ss:$8 sps:$4 sm:$0xff]   ;;  %v99_v16 = vld [vmem:[#allocation2 + $0x28] sm:$0xff]  ;;  %v107_v21 = vpack.c.bf16 %v100_v15, %v100_v15  ;;  %p1986_p11 = scmp.ne.s32.totalorder %s1475_s4, %s1985_s19  ;;  %p1991_p13 = scmp.lt.s32.totalorder %s1985_s19, %s1985_s19 }
  0x59   :  { %713 = vmatpush1.bf16.msra.mxu0 %v1706_v26  ;;  %v106_v17 = vpack.c.bf16 %v99_v16, %v99_v16  ;;  %v1768_v18 = vld [vmem:[#allocation5 + $0x250] ss:$8 sps:$4 sm:$0xff]   ;;  %v1773_v20 = vld [vmem:[#allocation5 + $0x244] ss:$8 sps:$4 sm:$0xff]   ;;  %v1771_v22 = vld [vmem:[#allocation5 + $0x240] ss:$8 sps:$4 sm:$0xff]  }
  0x5a   :  { %754 = vmatpush1.bf16.msra.mxu1 %v1707_v27  ;;  %714 = vmatprep.subr.bf16.mxu0 %v1708_v28  ;;  %v1776_v23 = vld [vmem:[#allocation5 + $0x234] ss:$8 sps:$4 sm:$0xff]   ;;  %v1774_v24 = vld [vmem:[#allocation5 + $0x230] ss:$8 sps:$4 sm:$0xff]   ;;  %v1779_v25 = vld [vmem:[#allocation5 + $0x224] ss:$8 sps:$4 sm:$0xff]   ;;  %p1992_p0 = por %p1991_p13, %p1990_p12 }
  0x5b   :  { %755 = vmatprep.subr.bf16.mxu1 %v1710_v29  ;;  %v1777_v26 = vld [vmem:[#allocation5 + $0x220] ss:$8 sps:$4 sm:$0xff]   ;;  %v1782_v27 = vld [vmem:[#allocation5 + $0x214] ss:$8 sps:$4 sm:$0xff]   ;;  %v1780_v28 = vld [vmem:[#allocation5 + $0x210] ss:$8 sps:$4 sm:$0xff]  }
  0x5c   :  { %v1785_v29 = vld [vmem:[#allocation5 + $0x204] ss:$8 sps:$4 sm:$0xff]   ;;  %v1810_v46 = vld [vmem:[#allocation5 + $0x280] ss:$8 sps:$4 sm:$0xff]   ;;  %v1816_v52 = vld [vmem:[#allocation7 + $0x60] ss:$8 sps:$4 sm:$0xff]   ;;  %p1993_p1 = pnand %p1992_p0, %p1986_p11 }
  0x5d   :  { %715 = vmatpush1.bf16.msra.mxu0 %v1712_v30  ;;  %v1783_v30 = vld [vmem:[#allocation5 + $0x200] ss:$8 sps:$4 sm:$0xff]   ;;  %v1815_v49 = vld [vmem:[#allocation7 + $0x74] ss:$8 sps:$4 sm:$0xff]   ;;  %v1840_v4 = vld [vmem:[#allocation7 + $0xe0] ss:$8 sps:$4 sm:$0xff]  }
  0x5e   :  { %756 = vmatpush1.bf16.msra.mxu1 %v1713_v31  ;;  %716 = vmatprep.subr.bf16.mxu0 %v1714_v32  ;;  %v1788_v31 = vld [vmem:[#allocation5 + $0x2f4] ss:$8 sps:$4 sm:$0xff]   ;;  %v1786_v32 = vld [vmem:[#allocation5 + $0x2f0] ss:$8 sps:$4 sm:$0xff]   ;;  %v1813_v50 = vld [vmem:[#allocation7 + $0x70] ss:$8 sps:$4 sm:$0xff]  }
  0x5f   :  { %757 = vmatprep.subr.bf16.mxu1 %v1716_v33  ;;  %v1791_v33 = vld [vmem:[#allocation5 + $0x2e4] ss:$8 sps:$4 sm:$0xff]   ;;  %v1860_v15 = vld [vmem:[#allocation7 + $0x84] ss:$8 sps:$4 sm:$0xff]   ;;  %v1858_v16 = vld [vmem:[#allocation7 + $0x80] ss:$8 sps:$4 sm:$0xff]  }
  0x60   :  { %v1845_v5 = vld [vmem:[#allocation7 + $0xd4] ss:$8 sps:$4 sm:$0xff]  }
  0x61   :  { %717 = vmatpush2.bf16.msra.mxu0 %v1718_v34  ;;  %v1789_v34 = vld [vmem:[#allocation5 + $0x2e0] ss:$8 sps:$4 sm:$0xff]  }
  0x62   :  { %758 = vmatpush2.bf16.msra.mxu1 %v1719_v35  ;;  %718 = vmatprep.subr.bf16.mxu0 %v1720_v36  ;;  %v1794_v35 = vld [vmem:[#allocation5 + $0x2d4] ss:$8 sps:$4 sm:$0xff]   ;;  %v1792_v36 = vld [vmem:[#allocation5 + $0x2d0] ss:$8 sps:$4 sm:$0xff]  }
  0x63   :  { %759 = vmatprep.subr.bf16.mxu1 %v1722_v37  ;;  %v1797_v37 = vld [vmem:[#allocation5 + $0x2c4] ss:$8 sps:$4 sm:$0xff]  }
  0x65   :  { %719 = vmatpush2.bf16.msra.mxu0 %v1724_v38  ;;  %v1795_v38 = vld [vmem:[#allocation5 + $0x2c0] ss:$8 sps:$4 sm:$0xff]  }
  0x66   :  { %760 = vmatpush2.bf16.msra.mxu1 %v1725_v39  ;;  %720 = vmatprep.subr.bf16.mxu0 %v1726_v40  ;;  %v1800_v39 = vld [vmem:[#allocation5 + $0x2b4] ss:$8 sps:$4 sm:$0xff]   ;;  %v1798_v40 = vld [vmem:[#allocation5 + $0x2b0] ss:$8 sps:$4 sm:$0xff]  }
  0x67   :  { %761 = vmatprep.subr.bf16.mxu1 %v1728_v41  ;;  %v1803_v41 = vld [vmem:[#allocation5 + $0x2a4] ss:$8 sps:$4 sm:$0xff]  }
  0x69   :  { %721 = vmatpush2.bf16.msra.mxu0 %v1730_v42  ;;  %v1801_v42 = vld [vmem:[#allocation5 + $0x2a0] ss:$8 sps:$4 sm:$0xff]  }
  0x6a   :  { %762 = vmatpush2.bf16.msra.mxu1 %v1731_v43  ;;  %722 = vmatprep.subr.bf16.mxu0 %v1732_v44  ;;  %v1806_v43 = vld [vmem:[#allocation5 + $0x294] ss:$8 sps:$4 sm:$0xff]   ;;  %v1804_v44 = vld [vmem:[#allocation5 + $0x290] ss:$8 sps:$4 sm:$0xff]  }
  0x6b   :  { %763 = vmatprep.subr.bf16.mxu1 %v1734_v45  ;;  %v1812_v45 = vld [vmem:[#allocation5 + $0x284] ss:$8 sps:$4 sm:$0xff]  }
  0x6d   :  { %723 = vmatpush2.bf16.msra.mxu0 %v1736_v47  ;;  %v98_v47 = vld [vmem:[#allocation2 + $0x20] sm:$0xff] }
  0x6e   :  { %764 = vmatpush2.bf16.msra.mxu1 %v1737_v48  ;;  %724 = vmatprep.subr.bf16.mxu0 %v1738_v51  ;;  %v105_v48 = vpack.c.bf16 %v98_v47, %v98_v47  ;;  %v1818_v51 = vld [vmem:[#allocation7 + $0x64] ss:$8 sps:$4 sm:$0xff]  }
  0x6f   :  { %765 = vmatprep.subr.bf16.mxu1 %v1740_v53  ;;  %v1821_v53 = vld [vmem:[#allocation7 + $0x54] ss:$8 sps:$4 sm:$0xff]  }
  0x71   :  { %725 = vmatpush2.bf16.msra.mxu0 %v1742_v54  ;;  %v1819_v54 = vld [vmem:[#allocation7 + $0x50] ss:$8 sps:$4 sm:$0xff]  }
  0x72   :  { %766 = vmatpush2.bf16.msra.mxu1 %v1743_v55  ;;  %726 = vmatprep.subr.bf16.mxu0 %v1744_v56  ;;  %v1824_v55 = vld [vmem:[#allocation7 + $0x44] ss:$8 sps:$4 sm:$0xff]   ;;  %v1822_v56 = vld [vmem:[#allocation7 + $0x40] ss:$8 sps:$4 sm:$0xff]  }
  0x73   :  { %767 = vmatprep.subr.bf16.mxu1 %v1746_v57  ;;  %v1827_v57 = vld [vmem:[#allocation7 + $0x34] ss:$8 sps:$4 sm:$0xff]  }
  0x75   :  { %727 = vmatpush2.bf16.msra.mxu0 %v1748_v58  ;;  %v1825_v58 = vld [vmem:[#allocation7 + $0x30] ss:$8 sps:$4 sm:$0xff]  }
  0x76   :  { %768 = vmatpush2.bf16.msra.mxu1 %v1749_v59  ;;  %728 = vmatprep.subr.bf16.mxu0 %v1750_v60  ;;  %v1830_v59 = vld [vmem:[#allocation7 + $0x24] ss:$8 sps:$4 sm:$0xff]   ;;  %v1828_v60 = vld [vmem:[#allocation7 + $0x20] ss:$8 sps:$4 sm:$0xff]  }
  0x77   :  { %769 = vmatprep.subr.bf16.mxu1 %v1752_v61  ;;  %v1833_v61 = vld [vmem:[#allocation7 + $0x14] ss:$8 sps:$4 sm:$0xff]  }
  0x79   :  { %729 = vmatpush2.bf16.msra.mxu0 %v1754_v62  ;;  %v1831_v62 = vld [vmem:[#allocation7 + $0x10] ss:$8 sps:$4 sm:$0xff]  }
  0x7a   :  { %770 = vmatpush2.bf16.msra.mxu1 %v1755_v63  ;;  %730 = vmatprep.subr.bf16.mxu0 %v1756_v0  ;;  %v1836_v63 = vld [vmem:[#allocation7 + $0x4] ss:$8 sps:$4 sm:$0xff]   ;;  %v1834_v0 = vld [vmem:[#allocation7] ss:$8 sps:$4 sm:$0xff]  }
  0x7b   :  { %771 = vmatprep.subr.bf16.mxu1 %v1758_v1  ;;  %v1839_v1 = vld [vmem:[#allocation7 + $0xf4] ss:$8 sps:$4 sm:$0xff]  }
  0x7d   :  { %731 = vmatpush2.bf16.msra.mxu0 %v1760_v2  ;;  %v1837_v2 = vld [vmem:[#allocation7 + $0xf0] ss:$8 sps:$4 sm:$0xff]  }
  0x7e   :  { %772 = vmatpush2.bf16.msra.mxu1 %v1761_v3  ;;  %782 = vmatprep.subr.bf16.mxu0 %v1764_v6  ;;  %v1842_v3 = vld [vmem:[#allocation7 + $0xe4] ss:$8 sps:$4 sm:$0xff]   ;;  %v1843_v6 = vld [vmem:[#allocation7 + $0xd0] ss:$8 sps:$4 sm:$0xff]  }
  0x7f   :  { %837 = vmatprep.subr.bf16.mxu1 %v1809_v12  ;;  %v1852_v12 = vld [vmem:[#allocation7 + $0xa0] ss:$8 sps:$4 sm:$0xff]  }
  0x80   :  { %733 = vmatmul.mubr.bf16.vlgmr.msra.gmra.mxu0 %v101_v7  ;;  %v1848_v7 = vld [vmem:[#allocation7 + $0xc4] ss:$8 sps:$4 sm:$0xff]  }
  0x81   :  { %774 = vmatmul.mubr.bf16.vlgmr.msra.gmra.mxu1 %v103_v8  ;;  %783 = vmatpush1.bf16.msra.mxu0 %v1762_v9  ;;  %v1846_v8 = vld [vmem:[#allocation7 + $0xc0] ss:$8 sps:$4 sm:$0xff]   ;;  %v1851_v9 = vld [vmem:[#allocation7 + $0xb4] ss:$8 sps:$4 sm:$0xff]  }
  0x82   :  { %784 = vmatprep.subr.bf16.mxu0 %v1767_v10  ;;  %838 = vmatpush1.bf16.msra.mxu1 %v1807_v11  ;;  %v1849_v10 = vld [vmem:[#allocation7 + $0xb0] ss:$8 sps:$4 sm:$0xff]   ;;  %v1854_v11 = vld [vmem:[#allocation7 + $0xa4] ss:$8 sps:$4 sm:$0xff]  }
  0x83   :  { %855 = vmatprep.mubr.bf16.mxu1 %v2022_v19  ;;  %814 = vmatprep.mubr.bf16.mxu0 %v106_v17 }
  0x84   :  { %1157 = vmatprep.subr.bf16.mxu1 %v1815_v49 }
  0x85   :  { %785 = vmatpush1.bf16.msra.mxu0 %v1765_v13  ;;  %v1857_v13 = vld [vmem:[#allocation7 + $0x94] ss:$8 sps:$4 sm:$0xff]  }
  0x86   :  { %786 = vmatprep.subr.bf16.mxu0 %v1770_v14  ;;  %v1855_v14 = vld [vmem:[#allocation7 + $0x90] ss:$8 sps:$4 sm:$0xff]  }
  0x89   :  { %1583 = vmatmul.mubr.msk.bf16.vlgmr.msra.gmra.mxu1 %vm696_vm0, %v107_v21  ;;  %787 = vmatpush1.bf16.msra.mxu0 %v1768_v18 }
  0x8a   :  { %788 = vmatprep.subr.bf16.mxu0 %v1773_v20  ;;  %1158 = vmatpush1.bf16.msra.mxu1 %v1813_v50 }
  0x8b   :  { %1159 = vmatprep.subr.bf16.mxu1 %v1818_v51 }
  0x8d   :  { %789 = vmatpush1.bf16.msra.mxu0 %v1771_v22 }
  0x8e   :  { %790 = vmatprep.subr.bf16.mxu0 %v1776_v23  ;;  %1160 = vmatpush1.bf16.msra.mxu1 %v1816_v52 }
  0x8f   :  { %1161 = vmatprep.subr.bf16.mxu1 %v1821_v53 }
  0x91   :  { %791 = vmatpush1.bf16.msra.mxu0 %v1774_v24 }
  0x92   :  { %792 = vmatprep.subr.bf16.mxu0 %v1779_v25  ;;  %1162 = vmatpush1.bf16.msra.mxu1 %v1819_v54 }
  0x93   :  { %1163 = vmatprep.subr.bf16.mxu1 %v1824_v55 }
  0x95   :  { %793 = vmatpush1.bf16.msra.mxu0 %v1777_v26 }
  0x96   :  { %794 = vmatprep.subr.bf16.mxu0 %v1782_v27  ;;  %1164 = vmatpush1.bf16.msra.mxu1 %v1822_v56 }
  0x97   :  { %1165 = vmatprep.subr.bf16.mxu1 %v1827_v57 }
  0x99   :  { %795 = vmatpush1.bf16.msra.mxu0 %v1780_v28 }
  0x9a   :  { %796 = vmatprep.subr.bf16.mxu0 %v1785_v29  ;;  %1166 = vmatpush1.bf16.msra.mxu1 %v1825_v58 }
  0x9b   :  { %1167 = vmatprep.subr.bf16.mxu1 %v1830_v59 }
  0x9d   :  { %797 = vmatpush1.bf16.msra.mxu0 %v1783_v30 }
  0x9e   :  { %798 = vmatprep.subr.bf16.mxu0 %v1788_v31  ;;  %1168 = vmatpush1.bf16.msra.mxu1 %v1828_v60 }
  0x9f   :  { %1169 = vmatprep.subr.bf16.mxu1 %v1833_v61 }
  0xa1   :  { %799 = vmatpush2.bf16.msra.mxu0 %v1786_v32 }
  0xa2   :  { %800 = vmatprep.subr.bf16.mxu0 %v1791_v33  ;;  %1170 = vmatpush1.bf16.msra.mxu1 %v1831_v62 }
  0xa3   :  { %1171 = vmatprep.subr.bf16.mxu1 %v1836_v63 }
  0xa5   :  { %801 = vmatpush2.bf16.msra.mxu0 %v1789_v34 }
  0xa6   :  { %802 = vmatprep.subr.bf16.mxu0 %v1794_v35  ;;  %1172 = vmatpush1.bf16.msra.mxu1 %v1834_v0 }
  0xa7   :  { %1173 = vmatprep.subr.bf16.mxu1 %v1839_v1 }
  0xa9   :  { %803 = vmatpush2.bf16.msra.mxu0 %v1792_v36 }
  0xaa   :  { %804 = vmatprep.subr.bf16.mxu0 %v1797_v37  ;;  %1174 = vmatpush2.bf16.msra.mxu1 %v1837_v2 }
  0xab   :  { %1175 = vmatprep.subr.bf16.mxu1 %v1842_v3 }
  0xad   :  { %805 = vmatpush2.bf16.msra.mxu0 %v1795_v38 }
  0xae   :  { %806 = vmatprep.subr.bf16.mxu0 %v1800_v39  ;;  %1176 = vmatpush2.bf16.msra.mxu1 %v1840_v4 }
  0xaf   :  { %1177 = vmatprep.subr.bf16.mxu1 %v1845_v5 }
  0xb1   :  { %807 = vmatpush2.bf16.msra.mxu0 %v1798_v40 }
  0xb2   :  { %808 = vmatprep.subr.bf16.mxu0 %v1803_v41  ;;  %1178 = vmatpush2.bf16.msra.mxu1 %v1843_v6 }
  0xb3   :  { %1179 = vmatprep.subr.bf16.mxu1 %v1848_v7 }
  0xb5   :  { %809 = vmatpush2.bf16.msra.mxu0 %v1801_v42 }
  0xb6   :  { %810 = vmatprep.subr.bf16.mxu0 %v1806_v43  ;;  %1180 = vmatpush2.bf16.msra.mxu1 %v1846_v8 }
  0xb7   :  { %1181 = vmatprep.subr.bf16.mxu1 %v1851_v9 }
  0xb9   :  { %811 = vmatpush2.bf16.msra.mxu0 %v1804_v44 }
  0xba   :  { %812 = vmatprep.subr.bf16.mxu0 %v1812_v45  ;;  %1182 = vmatpush2.bf16.msra.mxu1 %v1849_v10 }
  0xbb   :  { %1183 = vmatprep.subr.bf16.mxu1 %v1854_v11 }
  0xbd   :  { %813 = vmatpush2.bf16.msra.mxu0 %v1810_v46 }
  0xbe   :  { %1184 = vmatpush2.bf16.msra.mxu1 %v1852_v12  ;;  %v905_v12 = vlaneseq }
  0xbf   :  { %1185 = vmatprep.subr.bf16.mxu1 %v1857_v13 }
  0xc0   :  { %815 = vmatmul.mubr.bf16.vlgmr.msra.gmra.mxu0 %v105_v48 }
  0xc2   :  { %1186 = vmatpush2.bf16.msra.mxu1 %v1855_v14  ;;  %v906_v14 = vshrl.u32 %v905_v12, 7 }
  0xc3   :  { %1187 = vmatprep.subr.bf16.mxu1 %v1860_v15 }
  0xc4   :  { %v2088_v15 = vsub.s32 0, %v906_v14 }
  0xc6   :  { %1188 = vmatpush2.bf16.msra.mxu1 %v1858_v16  ;;  %v86_v16 = vld [vmem:[#allocation10] ss:$8 sm:$0x3] }
 0x140   :  { %v734_v17 = vpop.f32.mrf.mxu0 }
 0x141   :  { %v775_v18 = vpop.f32.mrf.mxu1 }
 0x142   :  { %v776_v19 = vadd.f32 %v775_v18, %v734_v17  ;;  %v736_v20 = vpop.f32.mrf.mxu0  ;;  %v2090_v17 = vsub.s32 1, %v906_v14  ;;  %v908_v18 = vrot.slane %v86_v16, %v2088_v15 }
 0x143   :  { %v777_v21 = vpop.f32.mrf.mxu1 }
 0x144   :  { %v738_v22 = vpop.f32.mrf.mxu0  ;;  %v778_v31 = vadd.f32 %v777_v21, %v736_v20  ;;  %v912_v21 = vrot.slane %v86_v16, %v2090_v17 }
 0x145   :  { %v779_v23 = vpop.f32.mrf.mxu1 }
 0x146   :  { %v739_v24 = vpop.f32.mrf.mxu0 }
 0x147   :  { %v780_v25 = vpop.f32.mrf.mxu1 }
 0x149   :  { %v857_v26 = vpop.f32.mrf.mxu1 }
 0x14b   :  { %v859_v27 = vpop.f32.mrf.mxu1 }
 0x14d   :  { %v861_v28 = vpop.f32.mrf.mxu1 }
 0x14f   :  { %v862_v29 = vpop.f32.mrf.mxu1 }
 0x180   :  { %v816_v30 = vpop.f32.mrf.mxu0 }
 0x181   :  { %v817_v32 = vadd.f32 %v816_v30, %v776_v19  ;;  %v2023_v19 = vmov 1966171168  }
 0x182   :  { %v818_v33 = vpop.f32.mrf.mxu0  ;;  %v923_v20 = vunpack.c.l.s4 %v2023_v19 }
 0x183   :  { %v2076_v34 = vadd.f32 %v857_v26, %v817_v32  ;;  %v819_v35 = vadd.f32 %v818_v33, %v778_v31  ;;  %v88_v32 = vld [vmem:[#allocation10 + $0x1] ss:$8 sm:$0x3] }
 0x184   :  { %v820_v36 = vpop.f32.mrf.mxu0  ;;  %v924_v24 = vunpack.c.0.s8 %v923_v20 }
 0x185   :  { %v864_v37 = vrot.slane %v2076_v34, 4  ;;  %v878_v38 = vmul.f32 %v2076_v34, %v2076_v34  ;;  %v2081_v39 = vadd.f32 %v859_v27, %v819_v35 }
 0x186   :  { %v821_v40 = vpop.f32.mrf.mxu0  ;;  %v2094_v29 = vsub.s32 %v924_v24, %v906_v14 }
 0x187   :  { %v865_v41 = vadd.f32 %v864_v37, %v2076_v34  ;;  %v880_v42 = vrot.slane %v878_v38, 4  ;;  %v870_v43 = vrot.slane %v2081_v39, 4  ;;  %v879_v44 = vmul.f32 %v2081_v39, %v2081_v39 }
 0x189   :  { %v866_v45 = vrot.slane %v865_v41, 2  ;;  %v881_v46 = vadd.f32 %v880_v42, %v878_v38  ;;  %v871_v47 = vadd.f32 %v870_v43, %v2081_v39  ;;  %v886_v48 = vrot.slane %v879_v44, 4 }
 0x18b   :  { %v867_v49 = vadd.f32 %v866_v45, %v865_v41  ;;  %v882_v50 = vrot.slane %v881_v46, 2  ;;  %v872_v51 = vrot.slane %v871_v47, 2  ;;  %v887_v52 = vadd.f32 %v886_v48, %v879_v44 }
 0x18d   :  { %v868_v53 = vrot.slane %v867_v49, 1  ;;  %v883_v54 = vadd.f32 %v882_v50, %v881_v46  ;;  %v873_v55 = vadd.f32 %v872_v51, %v871_v47  ;;  %v888_v56 = vrot.slane %v887_v52, 2  ;;  %v1862_v50 = vld [vmem:[#allocation8 + $0x38] sm:$0xff]   ;;  %v1863_v51 = vld [vmem:[#allocation8 + $0x70] sm:$0xff]  }
 0x18f   :  { %v869_v57 = vadd.f32 %v868_v53, %v867_v49  ;;  %v884_v58 = vrot.slane %v883_v54, 1  ;;  %v874_v59 = vrot.slane %v873_v55, 1  ;;  %v889_v60 = vadd.f32 %v888_v56, %v887_v52  ;;  %v1861_v49 = vld [vmem:[#allocation8 + $0x78] sm:$0xff]   ;;  %v1865_v52 = vld [vmem:[#allocation8 + $0x68] sm:$0xff]   ;;  %v1867_v53 = vld [vmem:[#allocation8 + $0x60] sm:$0xff]  }
 0x190   :  { %1632 = vmatprep.subr.bf16.mxu0 %v1861_v49  ;;  %v1870_v56 = vld [vmem:[#allocation8 + $0x18] sm:$0xff]  }
 0x191   :  { %v876_v61 = vmul.f32 0.125, %v869_v57  ;;  %v885_v62 = vadd.f32 %v884_v58, %v883_v54  ;;  %v875_v63 = vadd.f32 %v874_v59, %v873_v55  ;;  %v890_v0 = vrot.slane %v889_v60, 1  ;;  %1633 = vmatpush3.bf16.msra.mxu0 %v1862_v50  ;;  %v1868_v54 = vld [vmem:[#allocation8 + $0x20] sm:$0xff]   ;;  %v1869_v55 = vld [vmem:[#allocation8 + $0x58] sm:$0xff]   ;;  %v1871_v57 = vld [vmem:[#allocation8 + $0x50] sm:$0xff]  }
 0x192   :  { %1634 = vmatprep.subr.bf16.mxu0 %v1863_v51  ;;  %v1872_v58 = vld [vmem:[#allocation8 + $0x10] sm:$0xff]   ;;  %v1873_v59 = vld [vmem:[#allocation8 + $0x48] sm:$0xff]  }
 0x193   :  { %v892_v1 = vmul.f32 0.125, %v885_v62  ;;  %v894_v2 = vmul.f32 %v876_v61, %v876_v61  ;;  %v891_v3 = vadd.f32 %v890_v0, %v889_v60  ;;  %v877_v4 = vmul.f32 0.125, %v875_v63  ;;  %v1874_v60 = vld [vmem:[#allocation8 + $0x8] sm:$0xff]   ;;  %v1876_v62 = vld [vmem:[#allocation8] sm:$0xff]  }
 0x195   :  { %v896_v5 = vsub.f32 %v892_v1, %v894_v2  ;;  %v893_v6 = vmul.f32 0.125, %v891_v3  ;;  %v895_v7 = vmul.f32 %v877_v4, %v877_v4 }
 0x197   :  { %v898_v8 = vmax.f32 %v896_v5, 0.0  ;;  %v897_v9 = vsub.f32 %v893_v6, %v895_v7 }
 0x199   :  { %v900_v10 = vadd.f32 1e-05, %v898_v8  ;;  %v899_v11 = vmax.f32 %v897_v9, 0.0 }
 0x19b   :  { %1877 = vrsqrt.f32 %v900_v10  ;;  %v901_v13 = vadd.f32 1e-05, %v899_v11 }
 0x19d   :  { %1879 = vrsqrt.f32 %v901_v13 }
 0x1a8   :  { %v1878_v22 = vpop.eup %1877 }
 0x1a9   :  { %v915_v23 = vmul.f32 %v1878_v22, %v908_v18 }
 0x1aa   :  { %v1880_v25 = vpop.eup %1879 }
 0x1ab   :  { %v916_v26 = vmul.f32 %v1880_v25, %v912_v21  ;;  %v917_v27 = vmul.f32 %v915_v23, %v876_v61  ;;  %v941_v36 = vrot.slane %v915_v23, %v2088_v15  ;;  %v1875_v61 = vld [vmem:[#allocation8 + $0x40] sm:$0xff]  }
 0x1ad   :  { %v918_v28 = vmul.f32 %v916_v26, %v877_v4  ;;  %v945_v35 = vrot.slane %v916_v26, %v2088_v15  ;;  %v946_v41 = vmul.f32 %v941_v36, %v2076_v34  ;;  %v1866_v34 = vld [vmem:[#allocation8 + $0x28] sm:$0xff]  }
 0x1af   :  { %v921_v30 = vcombine.low %v917_v27, %v918_v28  ;;  %v947_v38 = vmul.f32 %v945_v35, %v2081_v39  ;;  %v1864_v39 = vld [vmem:[#allocation8 + $0x30] sm:$0xff]  }
 0x1b0   :  { %1635 = vmatpush3.bf16.msra.mxu0 %v1864_v39 }
 0x1b1   :  { %v928_v31 = vrot.slane %v921_v30, %v2094_v29  ;;  %1636 = vmatprep.subr.bf16.mxu0 %v1865_v52 }
 0x1b3   :  { %v935_v33 = vrot.slane %v928_v31, %v2094_v29 }
 0x1b4   :  { %1637 = vmatpush3.bf16.msra.mxu0 %v1866_v34 }
 0x1b5   :  { %v937_v37 = vsub.f32 %v88_v32, %v935_v33  ;;  %1638 = vmatprep.subr.bf16.mxu0 %v1867_v53 }
 0x1b7   :  { %v956_v40 = vrot.slane %v937_v37, %v2090_v17  ;;  %v952_v42 = vrot.slane %v937_v37, %v2088_v15 }
 0x1b8   :  { %1639 = vmatpush3.bf16.msra.mxu0 %v1868_v54 }
 0x1b9   :  { %v960_v43 = vadd.f32 %v956_v40, %v947_v38  ;;  %v959_v44 = vadd.f32 %v952_v42, %v946_v41  ;;  %1640 = vmatprep.subr.bf16.mxu0 %v1869_v55  ;;  %v92_v55 = vld [vmem:[#allocation10 + $0x3] ss:$8 sm:$0x3] }
 0x1bb   :  { %v962_v45 = vmax.f32 %v960_v43, 0.0  ;;  %v961_v46 = vmax.f32 %v959_v44, 0.0 }
 0x1bc   :  { %1641 = vmatpush3.bf16.msra.mxu0 %v1870_v56 }
 0x1bd   :  { %v964_v47 = vpack.c.bf16 %v962_v45, %v962_v45  ;;  %v963_v48 = vpack.c.bf16 %v961_v46, %v961_v46  ;;  %1642 = vmatprep.subr.bf16.mxu0 %v1871_v57  ;;  %v90_v46 = vld [vmem:[#allocation10 + $0x2] ss:$8 sm:$0x3] }
 0x1bf   :  { %1189 = vmatprep.mubr.bf16.mxu1 %v964_v47  ;;  %v1242_v47 = vrot.slane %v90_v46, %v2088_v15 }
 0x1c0   :  { %1190 = vmatmul.mubr.bf16.vlgmr.msra.gmra.mxu1 %v963_v48  ;;  %1643 = vmatpush3.bf16.msra.mxu0 %v1872_v58  ;;  %v1246_v48 = vrot.slane %v90_v46, %v2090_v17 }
 0x1c1   :  { %1644 = vmatprep.subr.bf16.mxu0 %v1873_v59 }
 0x1c4   :  { %1645 = vmatpush3.bf16.msra.mxu0 %v1874_v60 }
 0x1c5   :  { %1646 = vmatprep.subr.bf16.mxu0 %v1875_v61 }
 0x1c8   :  { %1647 = vmatpush3.bf16.msra.mxu0 %v1876_v62 }
 0x280   :  { %v1191_v63 = vpop.f32.mrf.mxu1 }
 0x281   :  { %v1198_v0 = vrot.slane %v1191_v63, 4  ;;  %v1212_v1 = vmul.f32 %v1191_v63, %v1191_v63 }
 0x282   :  { %v1193_v2 = vpop.f32.mrf.mxu1 }
 0x283   :  { %v1199_v3 = vadd.f32 %v1198_v0, %v1191_v63  ;;  %v1214_v4 = vrot.slane %v1212_v1, 4  ;;  %v1204_v5 = vrot.slane %v1193_v2, 4  ;;  %v1213_v6 = vmul.f32 %v1193_v2, %v1193_v2 }
 0x284   :  { %v1195_v7 = vpop.f32.mrf.mxu1 }
 0x285   :  { %v1200_v8 = vrot.slane %v1199_v3, 2  ;;  %v1215_v9 = vadd.f32 %v1214_v4, %v1212_v1  ;;  %v1205_v10 = vadd.f32 %v1204_v5, %v1193_v2  ;;  %v1220_v11 = vrot.slane %v1213_v6, 4 }
 0x286   :  { %v1196_v12 = vpop.f32.mrf.mxu1 }
 0x287   :  { %v1201_v13 = vadd.f32 %v1200_v8, %v1199_v3  ;;  %v1216_v14 = vrot.slane %v1215_v9, 2  ;;  %v1206_v16 = vrot.slane %v1205_v10, 2  ;;  %v1221_v18 = vadd.f32 %v1220_v11, %v1213_v6 }
 0x289   :  { %v1202_v19 = vrot.slane %v1201_v13, 1  ;;  %v1217_v20 = vadd.f32 %v1216_v14, %v1215_v9  ;;  %v1207_v21 = vadd.f32 %v1206_v16, %v1205_v10  ;;  %v1222_v22 = vrot.slane %v1221_v18, 2  ;;  %v93_v9 = vld [vmem:[#allocation10 + $0x4] ss:$0 sm:$0xff] }
 0x28b   :  { %v1203_v23 = vadd.f32 %v1202_v19, %v1201_v13  ;;  %v1218_v24 = vrot.slane %v1217_v20, 1  ;;  %v1208_v25 = vrot.slane %v1207_v21, 1  ;;  %v1223_v26 = vadd.f32 %v1222_v22, %v1221_v18 }
 0x28d   :  { %v1210_v27 = vmul.f32 0.125, %v1203_v23  ;;  %v1219_v28 = vadd.f32 %v1218_v24, %v1217_v20  ;;  %v1209_v30 = vadd.f32 %v1208_v25, %v1207_v21  ;;  %v1224_v31 = vrot.slane %v1223_v26, 1 }
 0x28f   :  { %v1226_v32 = vmul.f32 0.125, %v1219_v28  ;;  %v1228_v33 = vmul.f32 %v1210_v27, %v1210_v27  ;;  %v1211_v35 = vmul.f32 0.125, %v1209_v30  ;;  %v1225_v36 = vadd.f32 %v1224_v31, %v1223_v26 }
 0x291   :  { %v1230_v37 = vsub.f32 %v1226_v32, %v1228_v33  ;;  %v1227_v38 = vmul.f32 0.125, %v1225_v36  ;;  %v1229_v40 = vmul.f32 %v1211_v35, %v1211_v35 }
 0x293   :  { %v1232_v41 = vmax.f32 %v1230_v37, 0.0  ;;  %v1231_v42 = vsub.f32 %v1227_v38, %v1229_v40 }
 0x295   :  { %v1234_v43 = vadd.f32 1e-05, %v1232_v41  ;;  %v1233_v44 = vmax.f32 %v1231_v42, 0.0 }
 0x297   :  { %1881 = vrsqrt.f32 %v1234_v43  ;;  %v1235_v45 = vadd.f32 1e-05, %v1233_v44 }
 0x299   :  { %1883 = vrsqrt.f32 %v1235_v45 }
 0x2a4   :  { %v1882_v49 = vpop.eup %1881 }
 0x2a5   :  { %v1249_v50 = vmul.f32 %v1882_v49, %v1242_v47 }
 0x2a6   :  { %v1884_v51 = vpop.eup %1883 }
 0x2a7   :  { %v1250_v39 = vmul.f32 %v1884_v51, %v1246_v48  ;;  %v1251_v52 = vmul.f32 %v1249_v50, %v1210_v27  ;;  %v1275_v56 = vrot.slane %v1249_v50, %v2088_v15 }
 0x2a9   :  { %v1252_v34 = vmul.f32 %v1250_v39, %v1211_v35  ;;  %v1279_v57 = vrot.slane %v1250_v39, %v2088_v15  ;;  %v1280_v60 = vmul.f32 %v1275_v56, %v1191_v63 }
 0x2ab   :  { %v1255_v53 = vcombine.low %v1251_v52, %v1252_v34  ;;  %v1281_v61 = vmul.f32 %v1279_v57, %v1193_v2 }
 0x2ad   :  { %v1262_v54 = vrot.slane %v1255_v53, %v2094_v29 }
 0x2af   :  { %v1269_v58 = vrot.slane %v1262_v54, %v2094_v29 }
 0x2b1   :  { %v1271_v59 = vsub.f32 %v92_v55, %v1269_v58 }
 0x2b3   :  { %v1290_v62 = vrot.slane %v1271_v59, %v2090_v17  ;;  %v1286_v0 = vrot.slane %v1271_v59, %v2088_v15 }
 0x2b5   :  { %v1294_v1 = vadd.f32 %v1290_v62, %v1281_v61  ;;  %v1293_v3 = vadd.f32 %v1286_v0, %v1280_v60 }
 0x2b7   :  { %v1296_v4 = vmax.f32 %v1294_v1, 0.0  ;;  %v1295_v5 = vmax.f32 %v1293_v3, 0.0 }
 0x2b9   :  { %v1298_v6 = vpack.c.bf16 %v1296_v4, %v1296_v4  ;;  %v1297_v7 = vpack.c.bf16 %v1295_v5, %v1295_v5 }
 0x2bb   :  { %1459 = vmatprep.mubr.bf16.mxu0 %v1298_v6 }
 0x2bc   :  { %1460 = vmatmul.mubr.bf16.vlgmr.msra.gmra.mxu0 %v1297_v7 }
 0x37c   :  { %v1648_v8 = vpop.f32.mrf.mxu0 }
 0x37e   :  { %v1649_v10 = vpop.f32.mrf.mxu0 }
 0x37f   :  { %v1650_v29 = vadd.f32 %v1649_v10, %v1648_v8 }
 0x380   :  { %v1651_v63 = vpop.f32.mrf.mxu0 }
 0x381   :  { %v1462_v2 = vadd.f32 %v1650_v29, %v93_v9 }
 0x382   :  { %v1652_v17 = vpop.f32.mrf.mxu0 }
 0x383   :  { %1467 = vst [vmem:[#allocation11] sm:$0xff] %v1462_v2 }
 0x384   :  { %1996 = shalt.err (!%p1993_p1)
}
 0x385   :  { %1477 = dma.vmem_to_hbm [thread:$0]  %s1475_s4, 128, %s2120_s5, [#allocation4]  }
 0x386   :  { %2011 = dma.done.wait [#allocation4], 128  }
 0x387   :  { %2012 = vsyncadd [#allocation4], 4294967168 }
 0x388   :  { %1481 = vsyncpa [#allocation3], 1 }
 0x389   :  { %1482 = vsyncpa [#allocation6], 1 }
 0x38a   :  { %1483 = vsyncpa [#allocation9], 1 }
 0x38b   :  { %1484 = vsyncpa [#allocation4], 1 }

</bundles_post_ra>
